<compile_context>
chip_gen: v7x
topology: tpu7x:2x2x1
jax: 0.10.0
libtpu: 0.0.40
codegen_flags: <defaults>
</compile_context>

<pallas_src>
import functools

import jax
import jax.numpy as jnp
from jax import lax
from jax.experimental import pallas as pl
from jax.experimental.pallas import tpu as pltpu


def _sae_kernel(h_ref, we_ref, be_ref, wd_ref, bd_ref, o_ref, *, k):
    """One row-tile of the sparse autoencoder.

    h_ref : (TM, D)  bf16   hidden states tile
    we_ref: (L, D)   bf16   encoder weight, original nn.Linear layout
    be_ref: (1, L)   f32    encoder bias
    wd_ref: (D, L)   bf16   decoder weight, original nn.Linear layout
    bd_ref: (1, D)   f32    decoder bias
    o_ref : (TM, D)         dense reconstruction tile
    """
    h = h_ref[...]                                           # bf16 (TM, D)

    # encoder projection: contract D of h with D of W_enc -> (TM, L), f32 acc
    latent = lax.dot_general(
        h, we_ref[...],
        dimension_numbers=(((1,), (1,)), ((), ())),
        preferred_element_type=jnp.float32)
    latent = latent + be_ref[...]

    tm, lat = latent.shape

    # top-k by |value|, exactly k kept, lowest-index tie-break (torch.topk-like).
    # k iterations of: row-max (XLU reduce) -> lowest index attaining it ->
    # add to keep mask -> knock that element out of the running.
    absval = jnp.abs(latent)
    col = lax.broadcasted_iota(jnp.int32, (tm, lat), 1)
    keep = jnp.zeros((tm, lat), dtype=jnp.bool_)
    remaining = absval
    for _ in range(k):                      # k is small & static -> unrolled
        m = jnp.max(remaining, axis=-1, keepdims=True)        # (TM, 1)
        cand = jnp.where(remaining == m, col, lat)            # sentinel = L
        sel_idx = jnp.min(cand, axis=-1, keepdims=True)       # (TM, 1)
        sel = col == sel_idx                                   # one-hot row
        keep = keep | sel
        remaining = jnp.where(sel, -1.0, remaining)            # abs >= 0 > -1

    sparse = jnp.where(keep, latent, 0.0)                      # f32 (TM, L)

    # decoder projection: contract L of sparse with L of W_dec -> (TM, D)
    recon = lax.dot_general(
        sparse.astype(wd_ref.dtype), wd_ref[...],
        dimension_numbers=(((1,), (1,)), ((), ())),
        preferred_element_type=jnp.float32)
    recon = recon + bd_ref[...]
    o_ref[...] = recon.astype(o_ref.dtype)


def sparse_autoenc_forward(hidden_states, W_enc, b_enc, W_dec, b_dec,
                           sparsity_k, *, tile_rows=None):
    """Pallas SAE forward.

    hidden_states: (B, S, D)           (stand-in for BART encoder output)
    W_enc: (L, D), b_enc: (L,)         (nn.Linear(d_model, latent_dim))
    W_dec: (D, L), b_dec: (D,)         (nn.Linear(latent_dim, d_model))
    returns dense_reconstruction: (B, S, D)
    """
    B, S, D = hidden_states.shape
    L, D2 = W_enc.shape
    assert D2 == D
    M = B * S

    if tile_rows is None:
        # Prefer 256-row tiles (fills the 256x256 MXU on v6e/v7x, keeps the
        # per-step VMEM footprint small) and require grid >= 2 when possible
        # so BlockSpec double-buffering actually overlaps DMA with compute.
        tile_rows = M
        for cand in (256, 128, 64, 32, 16, 8):
            if cand <= M // 2 and M % cand == 0:
                tile_rows = cand
                break
    assert M % tile_rows == 0

    # bf16 operands for the MXU (f32 accumulate inside the kernel); weights
    # stay in their original layout — the kernel does NT contractions.
    h2 = hidden_states.reshape(M, D).astype(jnp.bfloat16)
    we = W_enc.astype(jnp.bfloat16)                  # (L, D)
    wd = W_dec.astype(jnp.bfloat16)                  # (D, L)
    be2 = b_enc.reshape(1, L).astype(jnp.float32)
    bd2 = b_dec.reshape(1, D).astype(jnp.float32)

    grid = (M // tile_rows,)
    kernel = functools.partial(_sae_kernel, k=int(sparsity_k))

    out_itemsize = jnp.dtype(hidden_states.dtype).itemsize
    cost = pl.CostEstimate(
        flops=2 * M * D * L * 2,                     # two matmuls
        transcendentals=0,
        bytes_accessed=(h2.size * 2 + we.size * 2 + wd.size * 2
                        + be2.size * 4 + bd2.size * 4 + M * D * out_itemsize))

    out = pl.pallas_call(
        kernel,
        out_shape=jax.ShapeDtypeStruct((M, D), hidden_states.dtype),
        grid_spec=pltpu.PrefetchScalarGridSpec(
            num_scalar_prefetch=0,
            grid=grid,
            in_specs=[
                pl.BlockSpec((tile_rows, D), lambda i: (i, 0)),  # hidden tile
                pl.BlockSpec((L, D), lambda i: (0, 0)),          # W_enc (resident)
                pl.BlockSpec((1, L), lambda i: (0, 0)),          # b_enc
                pl.BlockSpec((D, L), lambda i: (0, 0)),          # W_dec (resident)
                pl.BlockSpec((1, D), lambda i: (0, 0)),          # b_dec
            ],
            out_specs=pl.BlockSpec((tile_rows, D), lambda i: (i, 0)),
        ),
        compiler_params=pltpu.CompilerParams(
            dimension_semantics=("parallel",),
            vmem_limit_bytes=48 * 1024 * 1024),
        cost_estimate=cost,
    )(h2, we, be2, wd, bd2)

    return out.reshape(B, S, D)


def _reference_forward(hidden_states, W_enc, b_enc, W_dec, b_dec, k):
    """Pure-JAX reference mirroring the PyTorch forward (SAE part), with the
    same bf16-operand / f32-accumulate matmul numerics as the kernel."""
    h = hidden_states.astype(jnp.bfloat16)
    latent = jnp.dot(h, W_enc.astype(jnp.bfloat16).T,
                     preferred_element_type=jnp.float32) + b_enc
    _, idx = jax.lax.top_k(jnp.abs(latent), k)
    mask = jax.nn.one_hot(idx, latent.shape[-1], dtype=latent.dtype).sum(-2)
    sparse = latent * mask
    recon = jnp.dot(sparse.astype(jnp.bfloat16), W_dec.astype(jnp.bfloat16).T,
                    preferred_element_type=jnp.float32) + b_dec
    return recon.astype(hidden_states.dtype)


if __name__ == "__main__":
    # Small, TPU-friendly stand-ins for bart-base dims.
    B, S = 2, 8               # batch, sequence_token_length  -> M = 16, grid = 2
    D = 128                   # d_model (stand-in for 768)
    L = 256                   # latent_dim
    K = 8                     # sparsity_k

    key = jax.random.PRNGKey(0)
    k_h, k_we, k_be, k_wd, k_bd = jax.random.split(key, 5)

    hidden_states = jax.random.normal(k_h, (B, S, D), dtype=jnp.float32)
    W_enc = jax.random.normal(k_we, (L, D), dtype=jnp.float32) * 0.05
    b_enc = jax.random.normal(k_be, (L,), dtype=jnp.float32) * 0.05
    W_dec = jax.random.normal(k_wd, (D, L), dtype=jnp.float32) * 0.05
    b_dec = jax.random.normal(k_bd, (D,), dtype=jnp.float32) * 0.05

    recon = sparse_autoenc_forward(hidden_states, W_enc, b_enc,
                                   W_dec, b_dec, K)
    recon = jax.block_until_ready(recon)

    ref = _reference_forward(hidden_states, W_enc, b_enc, W_dec, b_dec, K)
    assert recon.shape == (B, S, D)
    assert jnp.allclose(recon, ref, atol=2e-2, rtol=2e-2), "mismatch vs reference"

    print("KERNEL_OK")
</pallas_src>

<mosaic_0001>
module attributes {stable_mosaic.version = 11 : i64} {
  func.func @_sae_kernel(%arg0: i32, %arg1: memref<8x128xbf16, #tpu.memory_space<vmem>>, %arg2: memref<256x128xbf16, #tpu.memory_space<vmem>>, %arg3: memref<1x256xf32, #tpu.memory_space<vmem>>, %arg4: memref<128x256xbf16, #tpu.memory_space<vmem>>, %arg5: memref<1x128xf32, #tpu.memory_space<vmem>>, %arg6: memref<8x128xf32, #tpu.memory_space<vmem>>) attributes {dimension_semantics = [#tpu.dimension_semantics<parallel>], iteration_bounds = array<i64: 2>, scalar_prefetch = 0 : i64, scratch_operands = 0 : i64, tpu.core_type = #tpu.core_type<tc>, window_params = [{transform_indices = @transform_0, window_bounds = array<i64: 8, 128>}, {pipeline_mode = #tpu.pipeline_mode<synchronous>, transform_indices = @transform_1, window_bounds = array<i64: 256, 128>}, {pipeline_mode = #tpu.pipeline_mode<synchronous>, transform_indices = @transform_2, window_bounds = array<i64: 1, 256>}, {pipeline_mode = #tpu.pipeline_mode<synchronous>, transform_indices = @transform_3, window_bounds = array<i64: 128, 256>}, {pipeline_mode = #tpu.pipeline_mode<synchronous>, transform_indices = @transform_4, window_bounds = array<i64: 1, 128>}, {transform_indices = @transform_5, window_bounds = array<i64: 8, 128>}]} {
    %c0 = arith.constant 0 : index
    %c0_0 = arith.constant 0 : index
    %0 = vector.load %arg1[%c0, %c0_0] : memref<8x128xbf16, #tpu.memory_space<vmem>>, vector<8x128xbf16>
    %c0_1 = arith.constant 0 : index
    %c0_2 = arith.constant 0 : index
    %1 = vector.load %arg2[%c0_1, %c0_2] : memref<256x128xbf16, #tpu.memory_space<vmem>>, vector<256x128xbf16>
    %cst = arith.constant dense<0.000000e+00> : vector<8x256xf32>
    %2 = tpu.matmul %0, %1, %cst {dimension_numbers = #tpu.dot_dimension_numbers<[1], [1], [0], [0], [0, 0, 1, 0], [], []>} : vector<8x128xbf16>, vector<256x128xbf16>, vector<8x256xf32> -> vector<8x256xf32>
    %c0_3 = arith.constant 0 : index
    %c0_4 = arith.constant 0 : index
    %3 = vector.load %arg3[%c0_3, %c0_4] : memref<1x256xf32, #tpu.memory_space<vmem>>, vector<1x256xf32>
    %4 = vector.broadcast %3 : vector<1x256xf32> to vector<8x256xf32>
    %5 = arith.addf %2, %4 : vector<8x256xf32>
    %6 = math.absf %5 : vector<8x256xf32>
    %7 = tpu.iota {dimensions = array<i32: 1>} : vector<8x256xi32>
    %false = arith.constant false
    %8 = vector.broadcast %false : i1 to vector<8x256xi1>
    %cst_5 = arith.constant dense<0xFF800000> : vector<8xf32>
    %9 = vector.multi_reduction <maximumf>, %6, %cst_5 [1] : vector<8x256xf32> to vector<8xf32>
    %10 = vector.shape_cast %9 : vector<8xf32> to vector<8x1xf32>
    %11 = vector.broadcast %10 : vector<8x1xf32> to vector<8x256xf32>
    %12 = arith.cmpf oeq, %6, %11 : vector<8x256xf32>
    %c256_i32 = arith.constant 256 : i32
    %13 = vector.broadcast %c256_i32 : i32 to vector<8x256xi32>
    %14 = arith.select %12, %7, %13 : vector<8x256xi1>, vector<8x256xi32>
    %cst_6 = arith.constant dense<2147483647> : vector<8xi32>
    %15 = vector.multi_reduction <minsi>, %14, %cst_6 [1] : vector<8x256xi32> to vector<8xi32>
    %16 = vector.shape_cast %15 : vector<8xi32> to vector<8x1xi32>
    %17 = vector.broadcast %16 : vector<8x1xi32> to vector<8x256xi32>
    %18 = arith.cmpi eq, %7, %17 : vector<8x256xi32>
    %19 = arith.ori %8, %18 : vector<8x256xi1>
    %cst_7 = arith.constant -1.000000e+00 : f32
    %20 = vector.broadcast %cst_7 : f32 to vector<8x256xf32>
    %21 = arith.select %18, %20, %6 : vector<8x256xi1>, vector<8x256xf32>
    %cst_8 = arith.constant dense<0xFF800000> : vector<8xf32>
    %22 = vector.multi_reduction <maximumf>, %21, %cst_8 [1] : vector<8x256xf32> to vector<8xf32>
    %23 = vector.shape_cast %22 : vector<8xf32> to vector<8x1xf32>
    %24 = vector.broadcast %23 : vector<8x1xf32> to vector<8x256xf32>
    %25 = arith.cmpf oeq, %21, %24 : vector<8x256xf32>
    %c256_i32_9 = arith.constant 256 : i32
    %26 = vector.broadcast %c256_i32_9 : i32 to vector<8x256xi32>
    %27 = arith.select %25, %7, %26 : vector<8x256xi1>, vector<8x256xi32>
    %cst_10 = arith.constant dense<2147483647> : vector<8xi32>
    %28 = vector.multi_reduction <minsi>, %27, %cst_10 [1] : vector<8x256xi32> to vector<8xi32>
    %29 = vector.shape_cast %28 : vector<8xi32> to vector<8x1xi32>
    %30 = vector.broadcast %29 : vector<8x1xi32> to vector<8x256xi32>
    %31 = arith.cmpi eq, %7, %30 : vector<8x256xi32>
    %32 = arith.ori %19, %31 : vector<8x256xi1>
    %cst_11 = arith.constant -1.000000e+00 : f32
    %33 = vector.broadcast %cst_11 : f32 to vector<8x256xf32>
    %34 = arith.select %31, %33, %21 : vector<8x256xi1>, vector<8x256xf32>
    %cst_12 = arith.constant dense<0xFF800000> : vector<8xf32>
    %35 = vector.multi_reduction <maximumf>, %34, %cst_12 [1] : vector<8x256xf32> to vector<8xf32>
    %36 = vector.shape_cast %35 : vector<8xf32> to vector<8x1xf32>
    %37 = vector.broadcast %36 : vector<8x1xf32> to vector<8x256xf32>
    %38 = arith.cmpf oeq, %34, %37 : vector<8x256xf32>
    %c256_i32_13 = arith.constant 256 : i32
    %39 = vector.broadcast %c256_i32_13 : i32 to vector<8x256xi32>
    %40 = arith.select %38, %7, %39 : vector<8x256xi1>, vector<8x256xi32>
    %cst_14 = arith.constant dense<2147483647> : vector<8xi32>
    %41 = vector.multi_reduction <minsi>, %40, %cst_14 [1] : vector<8x256xi32> to vector<8xi32>
    %42 = vector.shape_cast %41 : vector<8xi32> to vector<8x1xi32>
    %43 = vector.broadcast %42 : vector<8x1xi32> to vector<8x256xi32>
    %44 = arith.cmpi eq, %7, %43 : vector<8x256xi32>
    %45 = arith.ori %32, %44 : vector<8x256xi1>
    %cst_15 = arith.constant -1.000000e+00 : f32
    %46 = vector.broadcast %cst_15 : f32 to vector<8x256xf32>
    %47 = arith.select %44, %46, %34 : vector<8x256xi1>, vector<8x256xf32>
    %cst_16 = arith.constant dense<0xFF800000> : vector<8xf32>
    %48 = vector.multi_reduction <maximumf>, %47, %cst_16 [1] : vector<8x256xf32> to vector<8xf32>
    %49 = vector.shape_cast %48 : vector<8xf32> to vector<8x1xf32>
    %50 = vector.broadcast %49 : vector<8x1xf32> to vector<8x256xf32>
    %51 = arith.cmpf oeq, %47, %50 : vector<8x256xf32>
    %c256_i32_17 = arith.constant 256 : i32
    %52 = vector.broadcast %c256_i32_17 : i32 to vector<8x256xi32>
    %53 = arith.select %51, %7, %52 : vector<8x256xi1>, vector<8x256xi32>
    %cst_18 = arith.constant dense<2147483647> : vector<8xi32>
    %54 = vector.multi_reduction <minsi>, %53, %cst_18 [1] : vector<8x256xi32> to vector<8xi32>
    %55 = vector.shape_cast %54 : vector<8xi32> to vector<8x1xi32>
    %56 = vector.broadcast %55 : vector<8x1xi32> to vector<8x256xi32>
    %57 = arith.cmpi eq, %7, %56 : vector<8x256xi32>
    %58 = arith.ori %45, %57 : vector<8x256xi1>
    %cst_19 = arith.constant -1.000000e+00 : f32
    %59 = vector.broadcast %cst_19 : f32 to vector<8x256xf32>
    %60 = arith.select %57, %59, %47 : vector<8x256xi1>, vector<8x256xf32>
    %cst_20 = arith.constant dense<0xFF800000> : vector<8xf32>
    %61 = vector.multi_reduction <maximumf>, %60, %cst_20 [1] : vector<8x256xf32> to vector<8xf32>
    %62 = vector.shape_cast %61 : vector<8xf32> to vector<8x1xf32>
    %63 = vector.broadcast %62 : vector<8x1xf32> to vector<8x256xf32>
    %64 = arith.cmpf oeq, %60, %63 : vector<8x256xf32>
    %c256_i32_21 = arith.constant 256 : i32
    %65 = vector.broadcast %c256_i32_21 : i32 to vector<8x256xi32>
    %66 = arith.select %64, %7, %65 : vector<8x256xi1>, vector<8x256xi32>
    %cst_22 = arith.constant dense<2147483647> : vector<8xi32>
    %67 = vector.multi_reduction <minsi>, %66, %cst_22 [1] : vector<8x256xi32> to vector<8xi32>
    %68 = vector.shape_cast %67 : vector<8xi32> to vector<8x1xi32>
    %69 = vector.broadcast %68 : vector<8x1xi32> to vector<8x256xi32>
    %70 = arith.cmpi eq, %7, %69 : vector<8x256xi32>
    %71 = arith.ori %58, %70 : vector<8x256xi1>
    %cst_23 = arith.constant -1.000000e+00 : f32
    %72 = vector.broadcast %cst_23 : f32 to vector<8x256xf32>
    %73 = arith.select %70, %72, %60 : vector<8x256xi1>, vector<8x256xf32>
    %cst_24 = arith.constant dense<0xFF800000> : vector<8xf32>
    %74 = vector.multi_reduction <maximumf>, %73, %cst_24 [1] : vector<8x256xf32> to vector<8xf32>
    %75 = vector.shape_cast %74 : vector<8xf32> to vector<8x1xf32>
    %76 = vector.broadcast %75 : vector<8x1xf32> to vector<8x256xf32>
    %77 = arith.cmpf oeq, %73, %76 : vector<8x256xf32>
    %c256_i32_25 = arith.constant 256 : i32
    %78 = vector.broadcast %c256_i32_25 : i32 to vector<8x256xi32>
    %79 = arith.select %77, %7, %78 : vector<8x256xi1>, vector<8x256xi32>
    %cst_26 = arith.constant dense<2147483647> : vector<8xi32>
    %80 = vector.multi_reduction <minsi>, %79, %cst_26 [1] : vector<8x256xi32> to vector<8xi32>
    %81 = vector.shape_cast %80 : vector<8xi32> to vector<8x1xi32>
    %82 = vector.broadcast %81 : vector<8x1xi32> to vector<8x256xi32>
    %83 = arith.cmpi eq, %7, %82 : vector<8x256xi32>
    %84 = arith.ori %71, %83 : vector<8x256xi1>
    %cst_27 = arith.constant -1.000000e+00 : f32
    %85 = vector.broadcast %cst_27 : f32 to vector<8x256xf32>
    %86 = arith.select %83, %85, %73 : vector<8x256xi1>, vector<8x256xf32>
    %cst_28 = arith.constant dense<0xFF800000> : vector<8xf32>
    %87 = vector.multi_reduction <maximumf>, %86, %cst_28 [1] : vector<8x256xf32> to vector<8xf32>
    %88 = vector.shape_cast %87 : vector<8xf32> to vector<8x1xf32>
    %89 = vector.broadcast %88 : vector<8x1xf32> to vector<8x256xf32>
    %90 = arith.cmpf oeq, %86, %89 : vector<8x256xf32>
    %c256_i32_29 = arith.constant 256 : i32
    %91 = vector.broadcast %c256_i32_29 : i32 to vector<8x256xi32>
    %92 = arith.select %90, %7, %91 : vector<8x256xi1>, vector<8x256xi32>
    %cst_30 = arith.constant dense<2147483647> : vector<8xi32>
    %93 = vector.multi_reduction <minsi>, %92, %cst_30 [1] : vector<8x256xi32> to vector<8xi32>
    %94 = vector.shape_cast %93 : vector<8xi32> to vector<8x1xi32>
    %95 = vector.broadcast %94 : vector<8x1xi32> to vector<8x256xi32>
    %96 = arith.cmpi eq, %7, %95 : vector<8x256xi32>
    %97 = arith.ori %84, %96 : vector<8x256xi1>
    %cst_31 = arith.constant -1.000000e+00 : f32
    %98 = vector.broadcast %cst_31 : f32 to vector<8x256xf32>
    %99 = arith.select %96, %98, %86 : vector<8x256xi1>, vector<8x256xf32>
    %cst_32 = arith.constant dense<0xFF800000> : vector<8xf32>
    %100 = vector.multi_reduction <maximumf>, %99, %cst_32 [1] : vector<8x256xf32> to vector<8xf32>
    %101 = vector.shape_cast %100 : vector<8xf32> to vector<8x1xf32>
    %102 = vector.broadcast %101 : vector<8x1xf32> to vector<8x256xf32>
    %103 = arith.cmpf oeq, %99, %102 : vector<8x256xf32>
    %c256_i32_33 = arith.constant 256 : i32
    %104 = vector.broadcast %c256_i32_33 : i32 to vector<8x256xi32>
    %105 = arith.select %103, %7, %104 : vector<8x256xi1>, vector<8x256xi32>
    %cst_34 = arith.constant dense<2147483647> : vector<8xi32>
    %106 = vector.multi_reduction <minsi>, %105, %cst_34 [1] : vector<8x256xi32> to vector<8xi32>
    %107 = vector.shape_cast %106 : vector<8xi32> to vector<8x1xi32>
    %108 = vector.broadcast %107 : vector<8x1xi32> to vector<8x256xi32>
    %109 = arith.cmpi eq, %7, %108 : vector<8x256xi32>
    %110 = arith.ori %97, %109 : vector<8x256xi1>
    %cst_35 = arith.constant 0.000000e+00 : f32
    %111 = vector.broadcast %cst_35 : f32 to vector<8x256xf32>
    %112 = arith.select %110, %5, %111 : vector<8x256xi1>, vector<8x256xf32>
    %113 = arith.truncf %112 : vector<8x256xf32> to vector<8x256xbf16>
    %c0_36 = arith.constant 0 : index
    %c0_37 = arith.constant 0 : index
    %114 = vector.load %arg4[%c0_36, %c0_37] : memref<128x256xbf16, #tpu.memory_space<vmem>>, vector<128x256xbf16>
    %cst_38 = arith.constant dense<0.000000e+00> : vector<8x128xf32>
    %115 = tpu.matmul %113, %114, %cst_38 {dimension_numbers = #tpu.dot_dimension_numbers<[1], [1], [0], [0], [0, 0, 1, 0], [], []>} : vector<8x256xbf16>, vector<128x256xbf16>, vector<8x128xf32> -> vector<8x128xf32>
    %c0_39 = arith.constant 0 : index
    %c0_40 = arith.constant 0 : index
    %116 = vector.load %arg5[%c0_39, %c0_40] : memref<1x128xf32, #tpu.memory_space<vmem>>, vector<1x128xf32>
    %117 = vector.broadcast %116 : vector<1x128xf32> to vector<8x128xf32>
    %118 = arith.addf %115, %117 : vector<8x128xf32>
    %c0_41 = arith.constant 0 : index
    %c0_42 = arith.constant 0 : index
    %119 = vector.load %arg6[%c0_41, %c0_42] : memref<8x128xf32, #tpu.memory_space<vmem>>, vector<8x128xf32>
    tpu.vector_store %arg6[%c0_41, %c0_42], %118 {strides = array<i32>} : memref<8x128xf32, #tpu.memory_space<vmem>>, vector<8x128xf32>,
    return
  }
  func.func @transform_0(%arg0: i32) -> (i32, i32) {
    %c0_i32 = arith.constant 0 : i32
    %c0_i32_0 = arith.constant 0 : i32
    return %arg0, %c0_i32 : i32, i32
  }
  func.func @transform_1(%arg0: i32) -> (i32, i32) {
    %c0_i32 = arith.constant 0 : i32
    %c0_i32_0 = arith.constant 0 : i32
    %c0_i32_1 = arith.constant 0 : i32
    return %c0_i32, %c0_i32_0 : i32, i32
  }
  func.func @transform_2(%arg0: i32) -> (i32, i32) {
    %c0_i32 = arith.constant 0 : i32
    %c0_i32_0 = arith.constant 0 : i32
    %c0_i32_1 = arith.constant 0 : i32
    return %c0_i32, %c0_i32_0 : i32, i32
  }
  func.func @transform_3(%arg0: i32) -> (i32, i32) {
    %c0_i32 = arith.constant 0 : i32
    %c0_i32_0 = arith.constant 0 : i32
    %c0_i32_1 = arith.constant 0 : i32
    return %c0_i32, %c0_i32_0 : i32, i32
  }
  func.func @transform_4(%arg0: i32) -> (i32, i32) {
    %c0_i32 = arith.constant 0 : i32
    %c0_i32_0 = arith.constant 0 : i32
    %c0_i32_1 = arith.constant 0 : i32
    return %c0_i32, %c0_i32_0 : i32, i32
  }
  func.func @transform_5(%arg0: i32) -> (i32, i32) {
    %c0_i32 = arith.constant 0 : i32
    %c0_i32_0 = arith.constant 0 : i32
    return %arg0, %c0_i32 : i32, i32
  }
}

</mosaic_0001>

<bundles_post_ra>
// kernel: tpu_custom_call.1
= control target key start
LH: loop header
LB: loop body
LE: loop exit
PB: predicated region body
PF: predicated region fallthrough
CT: control target
= control target key end

     0   :  { %10 = vsyncpa [#allocation3], 0  ;;  %s1667_s0 = inlined_call_operand.hbm [shape: bf16[16,128], index: 0, kind: input, shape index: {}]   ;;  %s1668_s1 = inlined_call_operand.hbm [shape: bf16[256,128], index: 1, kind: input, shape index: {}]   ;;  %s1669_s2 = inlined_call_operand.vmem [shape: f32[1,256], index: 2, kind: input, shape index: {}]   ;;  %s1670_s3 = inlined_call_operand.hbm [shape: bf16[128,256], index: 3, kind: input, shape index: {}]   ;;  %s1671_s4 = inlined_call_operand.vmem [shape: f32[1,128], index: 4, kind: input, shape index: {}]   ;;  %s1672_s5 = inlined_call_operand.hbm [shape: f32[16,128], index: 5, kind: output, shape index: {}]  }
   0x1   :  { %12 = vsyncpa [#allocation3 + $0x1], 0 }
   0x2   :  { %13 = vsyncpa [#allocation6], 0 }
   0x3   :  { %14 = vsyncpa [#allocation4], 0 }
   0x4   :  { %16 = vsyncpa [#allocation4 + $0x1], 0  ;;  %s1310_s18 = smov 0   ;;  %s1312_s19 = smov 0  }
   0x5   :  { %s1314_s20 = smov 0   ;;  %s1316_s21 = smov 0  }
   0x6 LB: > { %s1331_s22 = sadd.s32 4294967295, %s1270_s21   ;;  %s936_s23 = sadd.s32 4294967294, %s1270_s21   ;;  %s1270_s21 = sphi %s1316_s21, %s1712_s21   ;;  %s1266_s20 = sphi %s1314_s20, %s1711_s20   ;;  %s1262_s19 = sphi %s1312_s19, %s1710_s19   ;;  %s1258_s18 = sphi %s1310_s18, %s1709_s18  }
   0x7   : > { %p42_p0 = scmp.ne.s32.totalorder %s1262_s19, %s1258_s18  ;;  %p1673_p1 = scmp.eq.s32.totalorder %s1331_s22, 0 }
   0x8   : > { %p156_p3 = scmp.eq.s32.totalorder %s936_s23, 1  ;;  %p937_p5 = scmp.ge.s32.totalorder %s1270_s21, 1 }
   0x9   : > { %p1340_p4 = por %p1673_p1, %p42_p0  ;;  %p163_p7 = scmp.lt.s32.totalorder %s1270_s21, 3 }
   0xa   : > { %p1345_p6 = por %p156_p3, %p42_p0  ;;  %s1272_s27 = smov [#allocation5]  }
   0xb   : > { %s1676_s24 = scalar_select %p1340_p4, 1, 0 }
   0xc   : > { %s1677_s25 = scalar_select %p1345_p6, 1, 0 }
   0xd   : > { %p1350_p8 = pnand %p937_p5, %p163_p7  ;;  %s175_s28 = sshll.u32 %s1272_s27, 4  ;;  %s1354_s28 = int_to_ptr.vmem [resolvable:$true] %s175_s28 }
   0xe   : > { %s1273_s30 = smov [#allocation7]   ;;  %s1114_s9 = scalar_lea.hbm %s1668_s1, 2048 }
   0xf   : > { %p1015_p9 = pneg %p1350_p8  ;;  %s191_s6 = sshll.u32 %s1273_s30, 4  ;;  %s1365_s6 = int_to_ptr.vmem [resolvable:$true] %s191_s6 }
  0x10   : > { %p1115_p12 = scmp.ne.s32.totalorder %s1668_s1, %s1114_s9  ;;  %p1121_p5 = scmp.lt.u32.totalorder %s1114_s9, %s1668_s1 }
  0x11   : > { %p1361_p11 = pnand %p1015_p9, %p1673_p1 }
  0x13   : > { %p1116_p13 = pneg %p1361_p11 }
  0x15   : > { %p1117_p0 = pnand %p1116_p13, %p1115_p12 }
  0x17   : > { %p1118_p3 = pneg %p1117_p0 }
  0x19   : > { %p1123_p7 = pnand %p1121_p5, %p1118_p3 }
  0x1b   : > { %1126 = shalt.err (!%p1123_p7)
}
  0x1c   : > { %s1127_s14 = scalar_lea.vmem %s1354_s28, 2048  ;;  %p1135_p2 = scmp.lt.s32.totalorder %s1354_s28, %s1354_s28 }
  0x1d   : > { %p1128_p9 = scmp.ne.s32.totalorder %s1354_s28, %s1127_s14  ;;  %p1136_p12 = scmp.lt.s32.totalorder %s1127_s14, %s1127_s14 }
  0x1f   : > { %p1130_p10 = pnand %p1128_p9, %p1116_p13  ;;  %p1137_p0 = por %p1136_p12, %p1135_p2 }
  0x21   : > { %p1131_p1 = pneg %p1130_p10 }
  0x23   : > { %p1138_p6 = pnand %p1137_p0, %p1131_p1 }
  0x25   : > { %1141 = shalt.err (!%p1138_p6)
}
  0x26   : > { %s1274_s15 = smov 64   ;;  %s1275_s16 = smov 4  }
  0x27   : > { %1018 = dma.hbm_to_vmem [thread:$0]  (!%p1361_p11), %s1668_s1, 2048, %s1354_s28, [#allocation6], %s1274_s15, %s1274_s15, %s1275_s16  }
  0x28   : > { %s1142_s7 = scalar_lea.hbm %s1670_s3, 2048 }
  0x29   : > { %p1143_p2 = scmp.ne.s32.totalorder %s1670_s3, %s1142_s7  ;;  %p1149_p10 = scmp.lt.u32.totalorder %s1142_s7, %s1670_s3 }
  0x2b   : > { %p1145_p1 = pnand %p1143_p2, %p1116_p13 }
  0x2d   : > { %p1146_p6 = pneg %p1145_p1 }
  0x2f   : > { %p1151_p3 = pnand %p1149_p10, %p1146_p6 }
  0x31   : > { %1154 = shalt.err (!%p1151_p3)
}
  0x32   : > { %s1155_s28 = scalar_lea.vmem %s1365_s6, 2048  ;;  %p1163_p12 = scmp.lt.s32.totalorder %s1365_s6, %s1365_s6 }
  0x33   : > { %p1156_p5 = scmp.ne.s32.totalorder %s1365_s6, %s1155_s28  ;;  %p1164_p0 = scmp.lt.s32.totalorder %s1155_s28, %s1155_s28 }
  0x35   : > { %p1158_p7 = pnand %p1156_p5, %p1116_p13  ;;  %p1165_p2 = por %p1164_p0, %p1163_p12 }
  0x37   : > { %p1159_p9 = pneg %p1158_p7 }
  0x39   : > { %p1166_p1 = pnand %p1165_p2, %p1159_p9 }
  0x3b   : > { %1169 = shalt.err (!%p1166_p1)
}
  0x3c   : > { %s1276_s12 = smov 128   ;;  %s1277_s13 = smov 8  }
  0x3d   : > { %1021 = dma.hbm_to_vmem [thread:$0]  (!%p1361_p11), %s1670_s3, 2048, %s1365_s6, [#allocation6], %s1276_s12, %s1276_s12, %s1277_s13  }
  0x3e   : > { %s1420_s16 = sadd.s32 1, %s1270_s21   ;;  %s29_s23 = sadd.s32 1, %s1266_s20 }
  0x3f   : > { %s26_s17 = ssub.s32 %s1270_s21, %s1420_s16  ;;  %p36_p6 = scmp.ne.s32.totalorder %s1266_s20, %s1262_s19 }
  0x40   : > { %p27_p13 = scmp.eq.s32.totalorder %s26_s17, 0  ;;  %p37_p10 = scmp.eq.s32.totalorder %s1270_s21, 0 }
  0x41   : > { %p1680_p5 = scmp.eq.s32.totalorder %s1331_s22, 1  ;;  %p1032_p9 = scmp.lt.s32.totalorder %s1270_s21, 2 }
  0x42   : > { %s1429_s27 = scalar_select %p27_p13, %s1266_s20, %s29_s23  }
  0x43   : > { %p38_p3 = por %p37_p10, %p36_p6  ;;  %p1433_p7 = por %p1680_p5, %p36_p6 }
  0x44   : > { %s208_s29 = sand.u32 1, %s1266_s20   ;;  %s942_s6 = sshll.u32 %s1270_s21, 6 }
  0x45   : > { %s1681_s30 = scalar_select %p1433_p7, 1, 0 }
  0x46   : > { %s941_s7 = sshll.u32 %s208_s29, 2  ;;  %s1443_s10 = scalar_lea.hbm %s1667_s0, %s942_s6 }
  0x47   : > { %s212_s11 = scalar_lea.vmem [#allocation2], %s941_s7  ;;  %p1447_p11 = pnand %p1032_p9, %p38_p3 }
  0x48   : > { %s219_s28 = sshll.u32 %s212_s11, 4  ;;  %s209_s13 = scalar_lea.sflag [#allocation3], %s208_s29  ;;  %s1445_s28 = int_to_ptr.vmem [resolvable:$true] %s219_s28 }
  0x49   : > { %s1170_s14 = scalar_lea.hbm %s1443_s10, 64  ;;  %p1172_p0 = pneg %p1447_p11 }
  0x4a   : > { %p1171_p12 = scmp.ne.s32.totalorder %s1443_s10, %s1170_s14  ;;  %s1175_s23 = scalar_lea.hbm %s1667_s0, 128 }
  0x4b   : > { %p1176_p13 = scmp.lt.u32.totalorder %s1443_s10, %s1667_s0  ;;  %p1177_p6 = scmp.lt.u32.totalorder %s1175_s23, %s1170_s14 }
  0x4c   : > { %p1173_p2 = pnand %p1172_p0, %p1171_p12  ;;  %p1179_p3 = scmp.lt.u32.totalorder %s1170_s14, %s1443_s10 }
  0x4d   : > { %p1178_p10 = por %p1177_p6, %p1176_p13 }
  0x4e   : > { %p1174_p1 = pneg %p1173_p2 }
  0x4f   : > { %p1180_p5 = por %p1179_p3, %p1178_p10 }
  0x51   : > { %p1181_p9 = pnand %p1180_p5, %p1174_p1 }
  0x53   : > { %1184 = shalt.err (!%p1181_p9)
}
  0x54   : > { %s1185_s29 = scalar_lea.vmem %s1445_s28, 64  ;;  %s1278_s8 = smov [#allocation2]  }
  0x55   : > { %p1186_p12 = scmp.ne.s32.totalorder %s1445_s28, %s1185_s29  ;;  %s1190_s9 = sshll.u32 %s1278_s8, 4  ;;  %s1191_s9 = int_to_ptr.vmem [resolvable:$false] %s1190_s9 }
  0x56   : > { %s1192_s11 = scalar_lea.vmem %s1191_s9, 128  ;;  %p1193_p4 = scmp.lt.s32.totalorder %s1445_s28, %s1191_s9 }
  0x57   : > { %p1188_p2 = pnand %p1186_p12, %p1172_p0  ;;  %p1194_p13 = scmp.lt.s32.totalorder %s1192_s11, %s1185_s29 }
  0x59   : > { %p1189_p7 = pneg %p1188_p2  ;;  %p1195_p6 = por %p1194_p13, %p1193_p4 }
  0x5b   : > { %p1196_p10 = pnand %p1195_p6, %p1189_p7 }
  0x5d   : > { %1199 = shalt.err (!%p1196_p10)
}
  0x5e   : > { %1025 = dma.hbm_to_vmem [thread:$0]  (!%p1447_p11), %s1443_s10, 64, %s1445_s28, %s209_s13  }
  0x5f   : > { %228 = sbr.rel (%p1350_p8) target bundleno = 4173 (0x104d), region = 40  ;;  %s1479_s14 = sand.u32 (!%p1350_p8), 1, %s1262_s19  }
  0x60   : > { %s944_s15 = sshll.u32 (!%p1350_p8), %s1479_s14, 2  ;;  %s231_s17 = scalar_lea.sflag (!%p1350_p8), [#allocation3], %s1479_s14 }
  0x61   : > { %s234_s23 = scalar_lea.vmem (!%p1350_p8), [#allocation2], %s944_s15  ;;  %p1683_p4 = scmp.ne.s32.totalorder (!%p1350_p8), %s1676_s24, 0 }
  0x66   : > { %1245 = dma.done.wait (%p1683_p4), %s231_s17, 64  }
  0x67   : > { %1247 = vsyncadd (%p1683_p4), %s231_s17, 4294967232  ;;  %p1684_p7 = scmp.eq.s32.totalorder %s1331_s22, 0 }
  0x69   : > { %1249 = dma.done.wait (%p1684_p7), [#allocation6], 4096   ;;  %p1685_p11 = pmov %p1684_p7 }
  0x6a   : > { %v1074_v0 = vld [vmem:[#allocation5 + $0x40] sm:$0xff]   ;;  %v1076_v2 = vld [vmem:[#allocation5 + $0x48] sm:$0xff]   ;;  %v1078_v4 = vld [vmem:[#allocation5 + $0x50] sm:$0xff]   ;;  %v305_v17 = vlaneseq  ;;  %s947_s10 = sshll.u32 %s1479_s14, 3  ;;  %s982_s13 = sshll.u32 %s1331_s22, 7 }
  0x6b   : > { %1251 = vsyncadd (%p1685_p11), [#allocation6], 4294963200  ;;  %v1075_v1 = vld [vmem:[#allocation5] sm:$0xff]   ;;  %985 = vmatprep.subr.bf16.mxu0 %v1074_v0  ;;  %v1077_v3 = vld [vmem:[#allocation5 + $0x8] sm:$0xff]   ;;  %s268_s7 = scalar_lea.vmem [#allocation8], %s947_s10  ;;  %s1623_s9 = scalar_lea.hbm %s1672_s5, %s982_s13 }
  0x6c   : > { %986 = vmatpush3.bf16.xpose.msra.mxu0 %v1075_v1  ;;  %v1079_v5 = vld [vmem:[#allocation5 + $0x10] sm:$0xff]   ;;  %v1080_v6 = vld [vmem:[#allocation5 + $0x58] sm:$0xff]   ;;  %v1082_v9 = vld [vmem:[#allocation5 + $0x60] sm:$0xff]   ;;  %v306_v18 = vshrl.u32 %v305_v17, 7  ;;  %v1500_v33 = vand.u32 127, %v305_v17  ;;  %s847_s6 = sshll.u32 %s268_s7, 4  ;;  %s1625_s6 = int_to_ptr.vmem [resolvable:$true] %s847_s6 }
  0x6d   : > { %987 = vmatprep.subr.bf16.mxu0 %v1076_v2  ;;  %v270_v7 = vld [vmem:[%s234_s23] sm:$0xf]  ;;  %v1083_v10 = vld [vmem:[#allocation5 + $0x20] sm:$0xff]   ;;  %v1084_v11 = vld [vmem:[#allocation5 + $0x68] sm:$0xff]   ;;  %s834_s11 = scalar_lea.sflag [#allocation4], %s1479_s14  ;;  %s1200_s22 = scalar_lea.vmem %s1625_s6, 128 }
  0x6e   : > { %1001 = vmatprep.mubr.bf16.mxu0 %v270_v7  ;;  %v1081_v8 = vld [vmem:[#allocation5 + $0x18] sm:$0xff]   ;;  %v1085_v12 = vld [vmem:[#allocation5 + $0x28] sm:$0xff]   ;;  %v1086_v13 = vld [vmem:[#allocation5 + $0x70] sm:$0xff]   ;;  %v307_v19 = vsub.s32 0, %v306_v18  ;;  %v311_v21 = vsub.s32 1, %v306_v18  ;;  %v1503_v34 = vadd.s32 128, %v1500_v33  ;;  %p1201_p8 = scmp.ne.s32.totalorder %s1625_s6, %s1200_s22 }
  0x6f   : > { %v1087_v14 = vld [vmem:[#allocation5 + $0x30] sm:$0xff]   ;;  %v1088_v15 = vld [vmem:[#allocation5 + $0x78] sm:$0xff]   ;;  %p1706_p0 = scmp.ne.s32.totalorder %s1681_s30, 0  ;;  %s1279_s15 = smov [#allocation8]  }
  0x70   : > { %v1089_v16 = vld [vmem:[#allocation5 + $0x38] sm:$0xff]   ;;  %s1204_s17 = sshll.u32 %s1279_s15, 4  ;;  %s1205_s17 = int_to_ptr.vmem [resolvable:$false] %s1204_s17 }
  0x71   : > { %v303_v20 = vld [vmem:[%s1669_s2] sm:$0x3]  ;;  %p1202_p1 = pnand %p1201_p8, %p1706_p0  ;;  %s1206_s23 = scalar_lea.vmem %s1205_s17, 256 }
  0x72   : > { %v308_v22 = vrot.slane %v303_v20, %v307_v19  ;;  %v312_v23 = vrot.slane %v303_v20, %v311_v21  ;;  %p1207_p5 = scmp.lt.s32.totalorder %s1625_s6, %s1205_s17  ;;  %p1208_p9 = scmp.lt.s32.totalorder %s1206_s23, %s1200_s22 }
  0x73   : > { %p1203_p3 = pneg %p1202_p1 }
  0x74   : > { %988 = vmatpush3.bf16.xpose.msra.mxu0 %v1077_v3  ;;  %p1209_p12 = por %p1208_p9, %p1207_p5 }
  0x75   : > { %989 = vmatprep.subr.bf16.mxu0 %v1078_v4 }
  0x76   : > { %p1210_p2 = pnand %p1209_p12, %p1203_p3 }
  0x7c   : > { %990 = vmatpush3.bf16.xpose.msra.mxu0 %v1079_v5 }
  0x7d   : > { %991 = vmatprep.subr.bf16.mxu0 %v1080_v6 }
  0x84   : > { %992 = vmatpush3.bf16.xpose.msra.mxu0 %v1081_v8 }
  0x85   : > { %993 = vmatprep.subr.bf16.mxu0 %v1082_v9 }
  0x8c   : > { %994 = vmatpush3.bf16.xpose.msra.mxu0 %v1083_v10 }
  0x8d   : > { %995 = vmatprep.subr.bf16.mxu0 %v1084_v11 }
  0x94   : > { %996 = vmatpush3.bf16.xpose.msra.mxu0 %v1085_v12 }
  0x95   : > { %997 = vmatprep.subr.bf16.mxu0 %v1086_v13 }
  0x9c   : > { %998 = vmatpush3.bf16.xpose.msra.mxu0 %v1087_v14 }
  0x9d   : > { %999 = vmatprep.subr.bf16.mxu0 %v1088_v15 }
  0xa4   : > { %1000 = vmatpush3.bf16.xpose.msra.mxu0 %v1089_v16 }
  0xab   : > { %1002 = vmatmul.mubr.bf16.vlgmr.msra.gmra.mrb[0].mxu0 %v270_v7 }
 0x17e   : > { %v445_v24 = vpop.f32.mrb[0].mxu0 }
 0x17f   : > { %v1494_v25 = vadd.f32 %v445_v24, %v308_v22  ;;  %v447_v26 = vpop.f32.mrb[1].mxu0 }
 0x180   : > { %v1496_v27 = vadd.f32 %v447_v26, %v312_v23  ;;  %v449_v28 = vpop.f32.mrb[2].mxu0 }
 0x181   : > { %v452_v29 = vand.u32 2147483647, %v1494_v25  ;;  %v450_v30 = vpop.f32.mrb[3].mxu0 }
 0x182   : > { %v453_v31 = vand.u32 2147483647, %v1496_v27 }
 0x184   : > { %v457_v32 = vmax.f32 %v452_v29, %v453_v31 }
 0x186   : > { %458 = vmax.xlane.f32.xlu0 %v457_v32 }
 0x213   : > { %v459_v35 = vpop.xlane.xlu0 %458 }
 0x214   : > { %vm460_vm0 = vcmp.eq.f32.partialorder %v452_v29, %v459_v35  ;;  %vm461_vm1 = vcmp.eq.f32.partialorder %v453_v31, %v459_v35 }
 0x215   : > { %v462_v36 = vsel %vm460_vm0, %v1500_v33, 256  ;;  %v463_v37 = vsel %vm461_vm1, %v1503_v34, 256 }
 0x216   : > { %vm464_vm2 = vcmp.lt.s32.totalorder %v462_v36, %v463_v37 }
 0x217   : > { %v465_v38 = vsel %vm464_vm2, %v462_v36, %v463_v37 }
 0x218   : > { %v467_v39 = vshra.s32 %v465_v38, 16  ;;  %v466_v41 = vand.u32 65535, %v465_v38 }
 0x21a   : > { %v469_v40 = vcvt.s32.f32 %v467_v39  ;;  %v468_v43 = vcvt.s32.f32 %v466_v41 }
 0x21c   : > { %470 = vmin.xlane.f32.xlu0 %v469_v40 }
 0x2a9   : > { %v471_v42 = vpop.xlane.xlu0 %470 }
 0x2aa   : > { %vm472_vm3 = vcmp.eq.f32.partialorder %v469_v40, %v471_v42  ;;  %v477_v45 = vcvt.f32.s32 %v471_v42 }
 0x2ab   : > { %v473_v44 = vsel %vm472_vm3, %v468_v43, inf }
 0x2ac   : > { %474 = vmin.xlane.f32.xlu1 %v473_v44  ;;  %v478_v47 = vshll.u32 %v477_v45, 16 }
 0x339   : > { %v475_v46 = vpop.xlane.xlu1 %474 }
 0x33a   : > { %v476_v48 = vcvt.f32.s32 %v475_v46 }
 0x33c   : > { %v479_v49 = vadd.s32 %v478_v47, %v476_v48 }
 0x33e   : > { %vm480_vm4 = vcmp.eq.s32.totalorder %v1500_v33, %v479_v49  ;;  %vm481_vm5 = vcmp.eq.s32.totalorder %v1503_v34, %v479_v49 }
 0x33f   : > { %v482_v50 = vsel %vm480_vm4, -1.0, %v452_v29  ;;  %v483_v51 = vsel %vm481_vm5, -1.0, %v453_v31 }
 0x340   : > { %v484_v52 = vmax.f32 %v482_v50, %v483_v51 }
 0x342   : > { %485 = vmax.xlane.f32.xlu1 %v484_v52 }
 0x3cf   : > { %v486_v53 = vpop.xlane.xlu1 %485 }
 0x3d0   : > { %vm487_vm6 = vcmp.eq.f32.partialorder %v482_v50, %v486_v53  ;;  %vm488_vm7 = vcmp.eq.f32.partialorder %v483_v51, %v486_v53 }
 0x3d1   : > { %v489_v54 = vsel %vm487_vm6, %v1500_v33, 256  ;;  %v490_v55 = vsel %vm488_vm7, %v1503_v34, 256 }
 0x3d2   : > { %vm491_vm8 = vcmp.lt.s32.totalorder %v489_v54, %v490_v55 }
 0x3d3   : > { %v492_v56 = vsel %vm491_vm8, %v489_v54, %v490_v55 }
 0x3d4   : > { %v494_v57 = vshra.s32 %v492_v56, 16  ;;  %v493_v59 = vand.u32 65535, %v492_v56 }
 0x3d6   : > { %v496_v58 = vcvt.s32.f32 %v494_v57  ;;  %v495_v61 = vcvt.s32.f32 %v493_v59 }
 0x3d8   : > { %497 = vmin.xlane.f32.xlu0 %v496_v58 }
 0x465   : > { %v498_v60 = vpop.xlane.xlu0 %497 }
 0x466   : > { %vm499_vm9 = vcmp.eq.f32.partialorder %v496_v58, %v498_v60  ;;  %v504_v63 = vcvt.f32.s32 %v498_v60 }
 0x467   : > { %v500_v62 = vsel %vm499_vm9, %v495_v61, inf }
 0x468   : > { %501 = vmin.xlane.f32.xlu1 %v500_v62  ;;  %v505_v1 = vshll.u32 %v504_v63, 16 }
 0x4f5   : > { %v502_v0 = vpop.xlane.xlu1 %501 }
 0x4f6   : > { %v503_v2 = vcvt.f32.s32 %v502_v0 }
 0x4f8   : > { %v506_v3 = vadd.s32 %v505_v1, %v503_v2  ;;  %v1104_v2 = vld [vmem:[#allocation7 + $0x40] ss:$8 sps:$4 sm:$0xff]  }
 0x4fa   : > { %vm507_vm10 = vcmp.eq.s32.totalorder %v1500_v33, %v506_v3  ;;  %vm508_vm11 = vcmp.eq.s32.totalorder %v1503_v34, %v506_v3 }
 0x4fb   : > { %v511_v4 = vsel %vm507_vm10, -1.0, %v482_v50  ;;  %v512_v5 = vsel %vm508_vm11, -1.0, %v483_v51  ;;  %vm509_vm0 = vmor %vm480_vm4, %vm507_vm10 }
 0x4fc   : > { %v513_v6 = vmax.f32 %v511_v4, %v512_v5  ;;  %vm510_vm1 = vmor %vm481_vm5, %vm508_vm11 }
 0x4fe   : > { %514 = vmax.xlane.f32.xlu0 %v513_v6  ;;  %v1110_v6 = vld [vmem:[#allocation7 + $0x60] ss:$8 sps:$4 sm:$0xff]  }
 0x58b   : > { %v515_v7 = vpop.xlane.xlu0 %514 }
 0x58c   : > { %vm516_vm12 = vcmp.eq.f32.partialorder %v511_v4, %v515_v7  ;;  %vm517_vm13 = vcmp.eq.f32.partialorder %v512_v5, %v515_v7 }
 0x58d   : > { %v518_v8 = vsel %vm516_vm12, %v1500_v33, 256  ;;  %v519_v9 = vsel %vm517_vm13, %v1503_v34, 256 }
 0x58e   : > { %vm520_vm14 = vcmp.lt.s32.totalorder %v518_v8, %v519_v9 }
 0x58f   : > { %v521_v10 = vsel %vm520_vm14, %v518_v8, %v519_v9 }
 0x590   : > { %v523_v11 = vshra.s32 %v521_v10, 16  ;;  %v522_v13 = vand.u32 65535, %v521_v10 }
 0x592   : > { %v525_v12 = vcvt.s32.f32 %v523_v11  ;;  %v524_v15 = vcvt.s32.f32 %v522_v13 }
 0x594   : > { %526 = vmin.xlane.f32.xlu1 %v525_v12 }
 0x621   : > { %v527_v14 = vpop.xlane.xlu1 %526 }
 0x622   : > { %vm528_vm15 = vcmp.eq.f32.partialorder %v525_v12, %v527_v14  ;;  %v533_v17 = vcvt.f32.s32 %v527_v14 }
 0x623   : > { %v529_v16 = vsel %vm528_vm15, %v524_v15, inf }
 0x624   : > { %530 = vmin.xlane.f32.xlu0 %v529_v16  ;;  %v534_v19 = vshll.u32 %v533_v17, 16 }
 0x6b1   : > { %v531_v18 = vpop.xlane.xlu0 %530 }
 0x6b2   : > { %v532_v20 = vcvt.f32.s32 %v531_v18 }
 0x6b4   : > { %v535_v21 = vadd.s32 %v534_v19, %v532_v20 }
 0x6b6   : > { %vm536_vm2 = vcmp.eq.s32.totalorder %v1500_v33, %v535_v21  ;;  %vm537_vm3 = vcmp.eq.s32.totalorder %v1503_v34, %v535_v21 }
 0x6b7   : > { %vm1533_vm6 = vmor %vm509_vm0, %vm536_vm2  ;;  %v540_v23 = vsel %vm536_vm2, -1.0, %v511_v4  ;;  %v541_v24 = vsel %vm537_vm3, -1.0, %v512_v5 }
 0x6b8   : > { %vm1537_vm7 = vmor %vm510_vm1, %vm537_vm3  ;;  %v542_v28 = vmax.f32 %v540_v23, %v541_v24 }
 0x6ba   : > { %543 = vmax.xlane.f32.xlu1 %v542_v28 }
 0x747   : > { %v544_v29 = vpop.xlane.xlu1 %543 }
 0x748   : > { %vm545_vm4 = vcmp.eq.f32.partialorder %v540_v23, %v544_v29  ;;  %vm546_vm8 = vcmp.eq.f32.partialorder %v541_v24, %v544_v29 }
 0x749   : > { %v547_v30 = vsel %vm545_vm4, %v1500_v33, 256  ;;  %v548_v31 = vsel %vm546_vm8, %v1503_v34, 256 }
 0x74a   : > { %vm549_vm5 = vcmp.lt.s32.totalorder %v547_v30, %v548_v31 }
 0x74b   : > { %v550_v32 = vsel %vm549_vm5, %v547_v30, %v548_v31 }
 0x74c   : > { %v552_v35 = vshra.s32 %v550_v32, 16  ;;  %v551_v37 = vand.u32 65535, %v550_v32 }
 0x74e   : > { %v554_v36 = vcvt.s32.f32 %v552_v35  ;;  %v553_v39 = vcvt.s32.f32 %v551_v37 }
 0x750   : > { %555 = vmin.xlane.f32.xlu0 %v554_v36 }
 0x7dd   : > { %v556_v38 = vpop.xlane.xlu0 %555 }
 0x7de   : > { %vm557_vm9 = vcmp.eq.f32.partialorder %v554_v36, %v556_v38  ;;  %v562_v41 = vcvt.f32.s32 %v556_v38 }
 0x7df   : > { %v558_v40 = vsel %vm557_vm9, %v553_v39, inf }
 0x7e0   : > { %559 = vmin.xlane.f32.xlu1 %v558_v40  ;;  %v563_v43 = vshll.u32 %v562_v41, 16 }
 0x86d   : > { %v560_v42 = vpop.xlane.xlu1 %559 }
 0x86e   : > { %v561_v44 = vcvt.f32.s32 %v560_v42 }
 0x870   : > { %v564_v45 = vadd.s32 %v563_v43, %v561_v44 }
 0x872   : > { %vm565_vm10 = vcmp.eq.s32.totalorder %v1500_v33, %v564_v45  ;;  %vm566_vm11 = vcmp.eq.s32.totalorder %v1503_v34, %v564_v45 }
 0x873   : > { %vm1547_vm12 = vmor %vm1533_vm6, %vm565_vm10  ;;  %v569_v47 = vsel %vm565_vm10, -1.0, %v540_v23  ;;  %v570_v48 = vsel %vm566_vm11, -1.0, %v541_v24 }
 0x874   : > { %v571_v49 = vmax.f32 %v569_v47, %v570_v48  ;;  %vm1553_vm13 = vmor %vm1537_vm7, %vm566_vm11 }
 0x876   : > { %572 = vmax.xlane.f32.xlu0 %v571_v49 }
 0x903   : > { %v573_v51 = vpop.xlane.xlu0 %572 }
 0x904   : > { %vm574_vm14 = vcmp.eq.f32.partialorder %v569_v47, %v573_v51  ;;  %vm575_vm15 = vcmp.eq.f32.partialorder %v570_v48, %v573_v51 }
 0x905   : > { %v576_v52 = vsel %vm574_vm14, %v1500_v33, 256  ;;  %v577_v53 = vsel %vm575_vm15, %v1503_v34, 256 }
 0x906   : > { %vm578_vm0 = vcmp.lt.s32.totalorder %v576_v52, %v577_v53 }
 0x907   : > { %v579_v54 = vsel %vm578_vm0, %v576_v52, %v577_v53 }
 0x908   : > { %v581_v55 = vshra.s32 %v579_v54, 16  ;;  %v580_v57 = vand.u32 65535, %v579_v54 }
 0x90a   : > { %v583_v56 = vcvt.s32.f32 %v581_v55  ;;  %v582_v59 = vcvt.s32.f32 %v580_v57  ;;  %v1090_v57 = vld [vmem:[#allocation7 + $0x4] ss:$8 sps:$4 sm:$0xff]  }
 0x90b   : > { %792 = vmatprep.subr.bf16.mxu1 %v1090_v57 }
 0x90c   : > { %584 = vmin.xlane.f32.xlu1 %v583_v56 }
 0x999   : > { %v585_v58 = vpop.xlane.xlu1 %584 }
 0x99a   : > { %vm586_vm1 = vcmp.eq.f32.partialorder %v583_v56, %v585_v58  ;;  %v591_v61 = vcvt.f32.s32 %v585_v58  ;;  %v1092_v58 = vld [vmem:[#allocation7] ss:$8 sps:$4 sm:$0xff]  }
 0x99b   : > { %v587_v60 = vsel %vm586_vm1, %v582_v59, inf  ;;  %v1093_v59 = vld [vmem:[#allocation7 + $0x14] ss:$8 sps:$4 sm:$0xff]   ;;  %793 = vmatpush1.bf16.xpose.msra.mxu1 %v1092_v58 }
 0x99c   : > { %588 = vmin.xlane.f32.xlu0 %v587_v60  ;;  %v592_v63 = vshll.u32 %v591_v61, 16  ;;  %794 = vmatprep.subr.bf16.mxu1 %v1093_v59  ;;  %v1095_v60 = vld [vmem:[#allocation7 + $0x10] ss:$8 sps:$4 sm:$0xff]   ;;  %v1096_v61 = vld [vmem:[#allocation7 + $0x24] ss:$8 sps:$4 sm:$0xff]  }
 0x9a3   : > { %795 = vmatpush1.bf16.xpose.msra.mxu1 %v1095_v60 }
 0x9a4   : > { %796 = vmatprep.subr.bf16.mxu1 %v1096_v61 }
 0xa29   : > { %v589_v62 = vpop.xlane.xlu0 %588 }
 0xa2a   : > { %v590_v0 = vcvt.f32.s32 %v589_v62  ;;  %v1098_v62 = vld [vmem:[#allocation7 + $0x20] ss:$8 sps:$4 sm:$0xff]  }
 0xa2b   : > { %797 = vmatpush1.bf16.xpose.msra.mxu1 %v1098_v62 }
 0xa2c   : > { %v593_v1 = vadd.s32 %v592_v63, %v590_v0  ;;  %v1099_v63 = vld [vmem:[#allocation7 + $0x34] ss:$8 sps:$4 sm:$0xff]   ;;  %v1101_v0 = vld [vmem:[#allocation7 + $0x30] ss:$8 sps:$4 sm:$0xff]  }
 0xa2d   : > { %798 = vmatprep.subr.bf16.mxu1 %v1099_v63 }
 0xa2e   : > { %vm594_vm2 = vcmp.eq.s32.totalorder %v1500_v33, %v593_v1  ;;  %vm595_vm3 = vcmp.eq.s32.totalorder %v1503_v34, %v593_v1  ;;  %v1102_v1 = vld [vmem:[#allocation7 + $0x44] ss:$8 sps:$4 sm:$0xff]  }
 0xa2f   : > { %vm1563_vm6 = vmor %vm1547_vm12, %vm594_vm2  ;;  %v598_v3 = vsel %vm594_vm2, -1.0, %v569_v47  ;;  %v599_v4 = vsel %vm595_vm3, -1.0, %v570_v48 }
 0xa30   : > { %v600_v5 = vmax.f32 %v598_v3, %v599_v4  ;;  %vm1569_vm7 = vmor %vm1553_vm13, %vm595_vm3 }
 0xa32   : > { %601 = vmax.xlane.f32.xlu1 %v600_v5  ;;  %v1108_v5 = vld [vmem:[#allocation7 + $0x64] ss:$8 sps:$4 sm:$0xff]  }
 0xa33   : > { %799 = vmatpush1.bf16.xpose.msra.mxu1 %v1101_v0 }
 0xa34   : > { %800 = vmatprep.subr.bf16.mxu1 %v1102_v1 }
 0xa3b   : > { %801 = vmatpush1.bf16.xpose.msra.mxu1 %v1104_v2 }
 0xabf   : > { %v602_v7 = vpop.xlane.xlu1 %601 }
 0xac0   : > { %vm603_vm4 = vcmp.eq.f32.partialorder %v598_v3, %v602_v7  ;;  %vm604_vm8 = vcmp.eq.f32.partialorder %v599_v4, %v602_v7 }
 0xac1   : > { %v605_v8 = vsel %vm603_vm4, %v1500_v33, 256  ;;  %v606_v9 = vsel %vm604_vm8, %v1503_v34, 256 }
 0xac2   : > { %vm607_vm5 = vcmp.lt.s32.totalorder %v605_v8, %v606_v9 }
 0xac3   : > { %v608_v10 = vsel %vm607_vm5, %v605_v8, %v606_v9 }
 0xac4   : > { %v610_v11 = vshra.s32 %v608_v10, 16  ;;  %v609_v13 = vand.u32 65535, %v608_v10 }
 0xac6   : > { %v612_v12 = vcvt.s32.f32 %v610_v11  ;;  %v611_v15 = vcvt.s32.f32 %v609_v13  ;;  %v1111_v11 = vld [vmem:[#allocation7 + $0x74] ss:$8 sps:$4 sm:$0xff]  }
 0xac8   : > { %613 = vmin.xlane.f32.xlu0 %v612_v12 }
 0xb55   : > { %v614_v14 = vpop.xlane.xlu0 %613 }
 0xb56   : > { %vm615_vm9 = vcmp.eq.f32.partialorder %v612_v12, %v614_v14  ;;  %v620_v17 = vcvt.f32.s32 %v614_v14  ;;  %v1113_v12 = vld [vmem:[#allocation7 + $0x70] ss:$8 sps:$4 sm:$0xff]  }
 0xb57   : > { %v616_v16 = vsel %vm615_vm9, %v611_v15, inf }
 0xb58   : > { %617 = vmin.xlane.f32.xlu1 %v616_v16  ;;  %v621_v19 = vshll.u32 %v620_v17, 16 }
 0xbe5   : > { %v618_v18 = vpop.xlane.xlu1 %617 }
 0xbe6   : > { %v619_v20 = vcvt.f32.s32 %v618_v18 }
 0xbe8   : > { %v622_v21 = vadd.s32 %v621_v19, %v619_v20 }
 0xbea   : > { %vm623_vm10 = vcmp.eq.s32.totalorder %v1500_v33, %v622_v21  ;;  %vm624_vm11 = vcmp.eq.s32.totalorder %v1503_v34, %v622_v21 }
 0xbeb   : > { %v627_v22 = vsel %vm623_vm10, -1.0, %v598_v3  ;;  %v628_v23 = vsel %vm624_vm11, -1.0, %v599_v4  ;;  %vm1579_vm12 = vmor %vm1563_vm6, %vm623_vm10  ;;  %v1105_v3 = vld [vmem:[#allocation7 + $0x54] ss:$8 sps:$4 sm:$0xff]   ;;  %v1107_v4 = vld [vmem:[#allocation7 + $0x50] ss:$8 sps:$4 sm:$0xff]  }
 0xbec   : > { %v629_v26 = vmax.f32 %v627_v22, %v628_v23  ;;  %vm1585_vm13 = vmor %vm1569_vm7, %vm624_vm11  ;;  %802 = vmatprep.subr.bf16.mxu1 %v1105_v3 }
 0xbed   : > { %803 = vmatpush1.bf16.xpose.msra.mxu1 %v1107_v4 }
 0xbee   : > { %630 = vmax.xlane.f32.xlu0 %v629_v26  ;;  %804 = vmatprep.subr.bf16.mxu1 %v1108_v5 }
 0xbf5   : > { %805 = vmatpush1.bf16.xpose.msra.mxu1 %v1110_v6 }
 0xbf6   : > { %806 = vmatprep.subr.bf16.mxu1 %v1111_v11 }
 0xbfd   : > { %807 = vmatpush1.bf16.xpose.msra.mxu1 %v1113_v12 }
 0xc7b   : > { %v631_v29 = vpop.xlane.xlu0 %630 }
 0xc7c   : > { %vm632_vm14 = vcmp.eq.f32.partialorder %v627_v22, %v631_v29  ;;  %vm633_vm15 = vcmp.eq.f32.partialorder %v628_v23, %v631_v29 }
 0xc7d   : > { %v634_v30 = vsel %vm632_vm14, %v1500_v33, 256  ;;  %v635_v31 = vsel %vm633_vm15, %v1503_v34, 256 }
 0xc7e   : > { %vm636_vm0 = vcmp.lt.s32.totalorder %v634_v30, %v635_v31 }
 0xc7f   : > { %v637_v32 = vsel %vm636_vm0, %v634_v30, %v635_v31 }
 0xc80   : > { %v639_v35 = vshra.s32 %v637_v32, 16  ;;  %v638_v37 = vand.u32 65535, %v637_v32 }
 0xc82   : > { %v641_v36 = vcvt.s32.f32 %v639_v35  ;;  %v640_v39 = vcvt.s32.f32 %v638_v37 }
 0xc84   : > { %642 = vmin.xlane.f32.xlu1 %v641_v36 }
 0xd11   : > { %v643_v38 = vpop.xlane.xlu1 %642 }
 0xd12   : > { %vm644_vm1 = vcmp.eq.f32.partialorder %v641_v36, %v643_v38  ;;  %v649_v41 = vcvt.f32.s32 %v643_v38 }
 0xd13   : > { %v645_v40 = vsel %vm644_vm1, %v640_v39, inf }
 0xd14   : > { %646 = vmin.xlane.f32.xlu0 %v645_v40  ;;  %v650_v43 = vshll.u32 %v649_v41, 16 }
 0xda1   : > { %v647_v42 = vpop.xlane.xlu0 %646 }
 0xda2   : > { %v648_v44 = vcvt.f32.s32 %v647_v42 }
 0xda4   : > { %v651_v45 = vadd.s32 %v650_v43, %v648_v44 }
 0xda6   : > { %vm652_vm2 = vcmp.eq.s32.totalorder %v1500_v33, %v651_v45  ;;  %vm653_vm3 = vcmp.eq.s32.totalorder %v1503_v34, %v651_v45 }
 0xda7   : > { %v656_v46 = vsel %vm652_vm2, -1.0, %v627_v22  ;;  %v657_v47 = vsel %vm653_vm3, -1.0, %v628_v23  ;;  %vm1595_vm6 = vmor %vm1579_vm12, %vm652_vm2 }
 0xda8   : > { %v658_v49 = vmax.f32 %v656_v46, %v657_v47  ;;  %vm1601_vm7 = vmor %vm1585_vm13, %vm653_vm3 }
 0xdaa   : > { %659 = vmax.xlane.f32.xlu1 %v658_v49 }
 0xe37   : > { %v660_v51 = vpop.xlane.xlu1 %659 }
 0xe38   : > { %vm661_vm4 = vcmp.eq.f32.partialorder %v656_v46, %v660_v51  ;;  %vm662_vm8 = vcmp.eq.f32.partialorder %v657_v47, %v660_v51 }
 0xe39   : > { %v663_v52 = vsel %vm661_vm4, %v1500_v33, 256  ;;  %v664_v53 = vsel %vm662_vm8, %v1503_v34, 256 }
 0xe3a   : > { %vm665_vm5 = vcmp.lt.s32.totalorder %v663_v52, %v664_v53 }
 0xe3b   : > { %v666_v54 = vsel %vm665_vm5, %v663_v52, %v664_v53 }
 0xe3c   : > { %v668_v55 = vshra.s32 %v666_v54, 16  ;;  %v667_v7 = vand.u32 65535, %v666_v54 }
 0xe3e   : > { %v670_v56 = vcvt.s32.f32 %v668_v55  ;;  %v669_v9 = vcvt.s32.f32 %v667_v7 }
 0xe40   : > { %671 = vmin.xlane.f32.xlu0 %v670_v56 }
 0xecd   : > { %v672_v8 = vpop.xlane.xlu0 %671 }
 0xece   : > { %vm673_vm9 = vcmp.eq.f32.partialorder %v670_v56, %v672_v8  ;;  %v678_v13 = vcvt.f32.s32 %v672_v8 }
 0xecf   : > { %v674_v10 = vsel %vm673_vm9, %v669_v9, inf }
 0xed0   : > { %675 = vmin.xlane.f32.xlu1 %v674_v10  ;;  %v679_v15 = vshll.u32 %v678_v13, 16 }
 0xf5d   : > { %v676_v14 = vpop.xlane.xlu1 %675 }
 0xf5e   : > { %v677_v16 = vcvt.f32.s32 %v676_v14 }
 0xf60   : > { %v680_v17 = vadd.s32 %v679_v15, %v677_v16 }
 0xf62   : > { %vm681_vm10 = vcmp.eq.s32.totalorder %v1500_v33, %v680_v17  ;;  %vm682_vm11 = vcmp.eq.s32.totalorder %v1503_v34, %v680_v17  ;;  %v964_v33 = vld [vmem:[%s1671_s4] ss:$0 sm:$0xff] }
 0xf63   : > { %vm683_vm12 = vmor %vm1595_vm6, %vm681_vm10 }
 0xf64   : > { %vm684_vm13 = vmor %vm1601_vm7, %vm682_vm11  ;;  %v685_v18 = vsel %vm683_vm12, %v1494_v25, 0.0 }
 0xf65   : > { %v686_v19 = vsel %vm684_vm13, %v1496_v27, 0.0  ;;  %v687_v20 = vpack.c.bf16 %v685_v18, %v685_v18 }
 0xf66   : > { %v688_v21 = vpack.c.bf16 %v686_v19, %v686_v19 }
 0xf68   : > { %824 = vmatprep.mubr.bf16.mxu1 %v688_v21 }
 0xf69   : > { %825 = vmatmul.mubr.bf16.vlgmr.msra.gmra.mrb[0].mxu1 %v687_v20 }
0x103c   : > { %v826_v34 = vpop.f32.mrb[0].mxu1 }
0x103d   : > { %v827_v22 = vadd.f32 %v964_v33, %v826_v34  ;;  %v828_v23 = vpop.f32.mrb[1].mxu1 }
0x103e   : > { %v829_v25 = vpop.f32.mrb[2].mxu1 }
0x103f   : > { %832 = vst [vmem:[%s268_s7] sm:$0xff] %v827_v22  ;;  %v830_v27 = vpop.f32.mrb[3].mxu1 }
0x1040   : > { %1213 = shalt.err (!%p1210_p2)
}
0x1041   : > { %s1214_s14 = scalar_lea.hbm %s1623_s9, 128  ;;  %s1218_s10 = scalar_lea.hbm %s1672_s5, 256 }
0x1042   : > { %p1215_p13 = scmp.ne.s32.totalorder %s1623_s9, %s1214_s14  ;;  %p1219_p4 = scmp.lt.u32.totalorder %s1623_s9, %s1672_s5 }
0x1043   : > { %p1220_p7 = scmp.lt.u32.totalorder %s1218_s10, %s1214_s14  ;;  %p1222_p8 = scmp.lt.u32.totalorder %s1214_s14, %s1623_s9 }
0x1044   : > { %p1216_p6 = pnand %p1215_p13, %p1706_p0 }
0x1045   : > { %p1221_p11 = por %p1220_p7, %p1219_p4 }
0x1046   : > { %p1217_p10 = pneg %p1216_p6 }
0x1047   : > { %p1223_p1 = por %p1222_p8, %p1221_p11 }
0x1049   : > { %p1224_p3 = pnand %p1223_p1, %p1217_p10 }
0x104b   : > { %1227 = shalt.err (!%p1224_p3)
}
0x104c   : > { %1013 = dma.vmem_to_hbm [thread:$0]  (%p1706_p0), %s1625_s6, 128, %s1623_s9, %s834_s11  }
0x104d PF: > { %s859_s13 = sand.u32 1, %s1258_s18   ;;  %p1707_p5 = scmp.ne.s32.totalorder %s1677_s25, 0 }
0x104e   : > { %p1708_p9 = scmp.ge.s32.totalorder %s1270_s21, 2  ;;  %s860_s7 = scalar_lea.sflag [#allocation4], %s859_s13 }
0x1050   : > { %p1027_p12 = pnand %p1708_p9, %p1707_p5 }
0x1052   : > { %1253 = dma.done.wait (!%p1027_p12), %s860_s7, 128  }
0x1053   : > { %1255 = vsyncadd (!%p1027_p12), %s860_s7, 4294967168  ;;  %p19_p2 = scmp.ge.s32.totalorder %s1420_s16, 4   ;;  %s1709_s18 = smov %s1262_s19 }
0x1054   : > { %s1710_s19 = smov %s1266_s20  ;;  %s1711_s20 = smov %s1429_s27 }
0x1055   : > { %s1712_s21 = smov %s1420_s16  ;;  %21 = sbr.rel (!%p19_p2) target bundleno = 6 (0x6), region = 93 }
0x105c   :  { %865 = vsyncpa [#allocation3], 1 }
0x105d   :  { %867 = vsyncpa [#allocation3 + $0x1], 1 }
0x105e   :  { %868 = vsyncpa [#allocation6], 1 }
0x105f   :  { %869 = vsyncpa [#allocation4], 1 }
0x1060   :  { %871 = vsyncpa [#allocation4 + $0x1], 1 }

</bundles_post_ra>
